<compile_context>
chip_gen: v6e
topology: v6e:2x2x1
jax: 0.10.0
libtpu: 0.0.40
codegen_flags: <defaults>
</compile_context>

<pallas_src>
import math

import jax
import jax.numpy as jnp
from jax.experimental import pallas as pl
from jax.experimental.pallas import tpu as pltpu


def _resolve_view_shape(in_shape, view_shape):
    """Resolve a torch-style view shape (supports a single -1)."""
    # Accept both View(2, -1) and View((2, -1)).
    if len(view_shape) == 1 and isinstance(view_shape[0], (tuple, list)):
        view_shape = tuple(view_shape[0])
    total = math.prod(in_shape)
    view_shape = tuple(int(s) for s in view_shape)
    if view_shape.count(-1) > 1:
        raise ValueError("only one -1 allowed in view shape")
    if -1 in view_shape:
        known = math.prod(s for s in view_shape if s != -1)
        if known == 0 or total % known != 0:
            raise ValueError(f"cannot view {in_shape} as {view_shape}")
        view_shape = tuple(total // known if s == -1 else s for s in view_shape)
    if math.prod(view_shape) != total:
        raise ValueError(f"cannot view {in_shape} as {view_shape}")
    return view_shape


# Below this many bytes the kernel launch + full HBM read/write dwarfs the
# metadata-only reshape, so the copy kernel is skipped.
_DEFAULT_MIN_COPY_BYTES = 1 << 20


def _plan_lane_dense(total):
    """Factor `total` elements into a lane-dense [lead, lane] layout."""
    for lane in (2048, 1024, 512, 256, 128):
        if total % lane == 0:
            return total // lane, lane
    return None


def _pick_chunks(lead):
    """Number of concurrent DMAs (evenly dividing the lead axis)."""
    for c in (4, 2, 1):
        if lead % c == 0:
            return c
    return 1


def _make_dma_copy_kernel(n_chunks, rows):
    """Kernel: issue `n_chunks` concurrent HBM->HBM DMAs, then wait on all."""

    def kernel(x_ref, o_ref, sems):
        if n_chunks == 1:
            cp = pltpu.make_async_copy(x_ref, o_ref, sems.at[0])
            cp.start()
            cp.wait()
            return
        copies = []
        for c in range(n_chunks):
            cp = pltpu.make_async_copy(
                x_ref.at[pl.ds(c * rows, rows)],
                o_ref.at[pl.ds(c * rows, rows)],
                sems.at[c],
            )
            cp.start()
            copies.append(cp)
        for cp in copies:
            cp.wait()

    return kernel


def pallas_view(x, *shape, min_copy_bytes=_DEFAULT_MIN_COPY_BYTES):
    """Equivalent of torch `x.view(*shape)`; large copies go through Pallas DMA."""
    target = _resolve_view_shape(x.shape, shape)
    total = math.prod(target) if target else 1
    itemsize = jnp.dtype(x.dtype).itemsize
    nbytes = total * itemsize

    plan = _plan_lane_dense(total)
    if plan is None or nbytes < min_copy_bytes:
        # torch.view is metadata-only: the faithful and fastest translation for
        # small or non-lane-dense cases is the pure metadata reshape (zero HBM
        # traffic) rather than a copy kernel.
        return jnp.reshape(x, target)

    lead, lane = plan
    n_chunks = _pick_chunks(lead)
    rows = lead // n_chunks

    # Glue: flatten to a lane-dense [lead, lane] element stream (row-major,
    # identical element order to torch .view on a contiguous tensor).  This is
    # only so the DMA's src/dst refs have matching shapes.
    x2d = jnp.reshape(x, (lead, lane))

    out2d = pl.pallas_call(
        _make_dma_copy_kernel(n_chunks, rows),
        out_shape=jax.ShapeDtypeStruct((lead, lane), x.dtype),
        in_specs=[pl.BlockSpec(memory_space=pl.ANY)],
        out_specs=pl.BlockSpec(memory_space=pl.ANY),
        scratch_shapes=[pltpu.SemaphoreType.DMA((n_chunks,))],
        cost_estimate=pl.CostEstimate(
            flops=0, transcendentals=0, bytes_accessed=2 * nbytes
        ),
    )(x2d)

    # Present the copied element stream under the requested view shape.
    return jnp.reshape(out2d, target)


class View:
    """JAX/Pallas mirror of the PyTorch View module (no parameters)."""

    def __init__(self, *shape):
        self.shape = shape

    def __call__(self, x):
        return pallas_view(x, *self.shape)


if __name__ == "__main__":
    key = jax.random.PRNGKey(0)

    # Input matches a typical NCHW activation: batch=2, channels=4, 16x16.
    x = jax.random.normal(key, (2, 4, 16, 16), dtype=jnp.float32)

    # View(2, -1): flatten channels+spatial per batch element -> (2, 1024).
    # At 8 KiB this takes the metadata-only fast path (cutoff).
    mod = View(2, -1)
    y = mod(x)
    jax.block_until_ready(y)
    ref = jnp.reshape(x, (2, -1))
    assert y.shape == (2, 1024), y.shape
    assert y.dtype == x.dtype
    assert bool(jnp.array_equal(y, ref))

    # Force the DMA copy kernel on the same small input (single whole-ref DMA).
    y_k = pallas_view(x, 2, -1, min_copy_bytes=0)
    jax.block_until_ready(y_k)
    assert y_k.shape == (2, 1024)
    assert bool(jnp.array_equal(y_k, ref))

    # Force the chunked-DMA path: 32768 elems -> lane=2048, lead=16, 4 chunks.
    x2 = jax.random.normal(jax.random.PRNGKey(2), (8, 4, 32, 32), jnp.float32)
    y2 = pallas_view(x2, -1, 64, min_copy_bytes=0)
    jax.block_until_ready(y2)
    assert y2.shape == (512, 64)
    assert bool(jnp.array_equal(y2, jnp.reshape(x2, (-1, 64))))

    # Non-multiple-of-128 total: exercises the metadata-only fallback path.
    x_odd = jax.random.normal(jax.random.PRNGKey(1), (2, 7, 3), jnp.float32)
    y3 = View(-1, 7)(x_odd)
    jax.block_until_ready(y3)
    assert y3.shape == (6, 7)
    assert bool(jnp.array_equal(y3, jnp.reshape(x_odd, (-1, 7))))

    print("KERNEL_OK")
</pallas_src>

<mosaic_0001>
module attributes {stable_mosaic.version = 11 : i64} {
  func.func @kernel(%arg0: memref<1x2048xf32, #tpu.memory_space<any>>, %arg1: memref<1x2048xf32, #tpu.memory_space<any>>, %arg2: memref<1x!tpu.dma_semaphore, #tpu.memory_space<semaphore_mem>>) attributes {dimension_semantics = [], scalar_prefetch = 0 : i64, scratch_operands = 1 : i64, tpu.core_type = #tpu.core_type<tc>} {
    %c0_i32 = arith.constant 0 : i32
    %0 = tpu.memref_slice %arg2[%c0_i32] : memref<1x!tpu.dma_semaphore, #tpu.memory_space<semaphore_mem>> -> memref<1x!tpu.dma_semaphore, #tpu.memory_space<semaphore_mem>>
    %1 = tpu.memref_squeeze %0 : memref<1x!tpu.dma_semaphore, #tpu.memory_space<semaphore_mem>> -> memref<!tpu.dma_semaphore, #tpu.memory_space<semaphore_mem>>
    tpu.enqueue_dma source(%arg0 : memref<1x2048xf32, #tpu.memory_space<any>>) target(%arg1 : memref<1x2048xf32, #tpu.memory_space<any>>) target_semaphore(%1 : memref<!tpu.dma_semaphore, #tpu.memory_space<semaphore_mem>>)
    %c0_i32_0 = arith.constant 0 : i32
    %2 = tpu.memref_slice %arg2[%c0_i32_0] : memref<1x!tpu.dma_semaphore, #tpu.memory_space<semaphore_mem>> -> memref<1x!tpu.dma_semaphore, #tpu.memory_space<semaphore_mem>>
    %3 = tpu.memref_squeeze %2 : memref<1x!tpu.dma_semaphore, #tpu.memory_space<semaphore_mem>> -> memref<!tpu.dma_semaphore, #tpu.memory_space<semaphore_mem>>
    tpu.wait_dma2 semaphore(%3 : memref<!tpu.dma_semaphore, #tpu.memory_space<semaphore_mem>>) src(%arg0 : memref<1x2048xf32, #tpu.memory_space<any>>) dst(%arg1 : memref<1x2048xf32, #tpu.memory_space<any>>)
    return
  }
}

</mosaic_0001>

<bundles_post_ra>
// kernel: tpu_custom_call.1
= control target key start
LH: loop header
LB: loop body
LE: loop exit
PB: predicated region body
PF: predicated region fallthrough
CT: control target
= control target key end

     0   :  { %s28_s6 = smov [#allocation2]   ;;  %s29_s7 = smov 131072   ;;  %s47_s0 = inlined_call_operand.hbm [shape: f32[1,2048], index: 0, kind: input, shape index: {}]   ;;  %s48_s1 = inlined_call_operand.hbm [shape: f32[1,2048], index: 1, kind: output, shape index: {}]  }
   0x1   :  { %s30_s8 = smov 0  }
   0x2   :  { %12 = dma.general %s47_s0, 256, %s48_s1, %s28_s6, %s29_s7, [#allocation4], %s30_s8, 0  }
   0x3   :  { %26 = dma.done.wait [#allocation2], 256 }
   0x4   :  { %27 = vsyncadd [#allocation2], 4294967040 }
   0x5   :  { %16 = vsyncmov [#allocation2] }
   0x8   :  { %s17_s13 = vpop.sfrf %16 }
   0x9   :  { %p22_p0 = scmp.ne.s32.totalorder %s17_s13, 0 }
   0xb   :  { %21 = shalt.err (%p22_p0)  }

</bundles_post_ra>
